<compile_context>
chip_gen: v7x
topology: tpu7x:2x2x1
jax: 0.10.0
libtpu: 0.0.40
codegen_flags: <defaults>
</compile_context>

<pallas_src>
import functools

import jax
import jax.numpy as jnp
from jax import lax
from jax.experimental import pallas as pl
from jax.experimental.pallas import tpu as pltpu


def _nsaelcn_kernel(x_ref, w_ref, enc_ref, rec_ref):
    # x_ref:   (TB, D_in)     VMEM (streamed per grid step)
    # w_ref:   (D_enc, D_in)  VMEM (resident across the whole grid)
    # enc_ref: (TB, D_enc)    VMEM output
    # rec_ref: (TB, D_in)     VMEM output
    x = x_ref[...]
    w = w_ref[...]

    # encoded = relu(x @ W.T) -- contraction over dim 1 of both operands, so
    # the "transpose" is MXU operand selection rather than an XLU copy.
    enc_f32 = lax.dot_general(
        x, w,
        dimension_numbers=(((1,), (1,)), ((), ())),
        preferred_element_type=jnp.float32,
    )
    enc_f32 = jnp.maximum(enc_f32, 0.0)

    # Cast once to the model dtype; write it out and feed the same value to
    # the decoder (matches PyTorch dtype behavior; bf16 keeps the MXU fast path).
    enc = enc_f32.astype(enc_ref.dtype)
    enc_ref[...] = enc

    # reconstructed = encoded @ W   (tied weights)
    rec = jnp.dot(enc, w, preferred_element_type=jnp.float32)
    rec_ref[...] = rec.astype(rec_ref.dtype)


@functools.partial(jax.jit, static_argnames=("block_b",))
def nsaelcn_forward(x, w, *, block_b=512):
    """x: (B, input_dim), w: (encoding_dim, input_dim) -> (encoded, reconstructed)."""
    B, d_in = x.shape
    d_enc, d_in_w = w.shape
    assert d_in == d_in_w, "weight / input dim mismatch"

    # --- choose the batch tile ---------------------------------------------
    if B <= block_b:
        tb = B                      # full extent: always a legal block shape
    else:
        tb = (block_b // 8) * 8     # sublane-aligned batch tile
        tb = max(tb, 8)

    # Pad the batch to a multiple of the tile (zero rows -> zero outputs).
    b_pad = pl.cdiv(B, tb) * tb
    x_p = x if b_pad == B else jnp.pad(x, ((0, b_pad - B), (0, 0)))
    num_tiles = b_pad // tb

    # --- VMEM budget (double-buffered streamed tiles + resident W) ----------
    itemsize = jnp.dtype(x.dtype).itemsize
    tile_bytes = (tb * d_in + tb * d_enc + tb * d_in) * itemsize
    needed = 2 * tile_bytes + 2 * d_enc * d_in * itemsize + (4 << 20)
    vmem_limit = int(min(max(needed, 16 << 20), 64 << 20))  # under v7x physical

    # --- cost estimate for XLA scheduling -----------------------------------
    flops = 2 * 2 * b_pad * d_in * d_enc  # two matmuls
    bytes_accessed = (
        b_pad * d_in * itemsize            # x in
        + d_enc * d_in * itemsize          # W in
        + b_pad * d_enc * itemsize         # encoded out
        + b_pad * d_in * itemsize          # reconstructed out
    )
    cost = pl.CostEstimate(
        flops=flops, transcendentals=0, bytes_accessed=bytes_accessed
    )

    enc_p, rec_p = pl.pallas_call(
        _nsaelcn_kernel,
        out_shape=(
            jax.ShapeDtypeStruct((b_pad, d_enc), x.dtype),
            jax.ShapeDtypeStruct((b_pad, d_in), x.dtype),
        ),
        grid_spec=pltpu.PrefetchScalarGridSpec(
            num_scalar_prefetch=0,
            grid=(num_tiles,),
            in_specs=[
                pl.BlockSpec((tb, d_in), lambda i: (i, 0)),      # x: streamed
                pl.BlockSpec((d_enc, d_in), lambda i: (0, 0)),   # W: resident
            ],
            out_specs=[
                pl.BlockSpec((tb, d_enc), lambda i: (i, 0)),     # encoded
                pl.BlockSpec((tb, d_in), lambda i: (i, 0)),      # reconstructed
            ],
        ),
        compiler_params=pltpu.CompilerParams(
            dimension_semantics=("parallel",),   # megacore sharding on v7x
            vmem_limit_bytes=vmem_limit,
        ),
        cost_estimate=cost,
    )(x_p, w)

    if b_pad != B:
        enc_p = enc_p[:B]
        rec_p = rec_p[:B]
    return enc_p, rec_p


def _reference(x, w):
    enc = jnp.maximum(x @ w.T, 0.0)
    rec = enc @ w
    return enc, rec


if __name__ == "__main__":
    # Small but MXU/lane-friendly shapes: batch tiles of 256 (grid of 2 steps),
    # input_dim and encoding_dim multiples of 128.
    B, INPUT_DIM, ENCODING_DIM = 512, 256, 128
    BLOCK_B = 256  # two grid steps -> exercises the batch-tiled pipeline

    key = jax.random.PRNGKey(0)
    kx, kw = jax.random.split(key)

    x = jax.random.normal(kx, (B, INPUT_DIM), dtype=jnp.float32)
    # Deterministic weight init mimicking nn.Linear default (uniform +-1/sqrt(fan_in))
    bound = 1.0 / (INPUT_DIM ** 0.5)
    w = jax.random.uniform(
        kw, (ENCODING_DIM, INPUT_DIM), dtype=jnp.float32, minval=-bound, maxval=bound
    )

    encoded, reconstructed = nsaelcn_forward(x, w, block_b=BLOCK_B)
    jax.block_until_ready((encoded, reconstructed))

    enc_ref, rec_ref = _reference(x, w)
    assert encoded.shape == (B, ENCODING_DIM)
    assert reconstructed.shape == (B, INPUT_DIM)
    assert jnp.allclose(encoded, enc_ref, atol=1e-5, rtol=1e-5)
    assert jnp.allclose(reconstructed, rec_ref, atol=1e-5, rtol=1e-5)

    print("KERNEL_OK")
</pallas_src>

<mosaic_0001>
module attributes {stable_mosaic.version = 11 : i64} {
  func.func @_nsaelcn_kernel(%arg0: i32, %arg1: memref<256x256xf32, #tpu.memory_space<vmem>>, %arg2: memref<128x256xf32, #tpu.memory_space<vmem>>, %arg3: memref<256x128xf32, #tpu.memory_space<vmem>>, %arg4: memref<256x256xf32, #tpu.memory_space<vmem>>) attributes {dimension_semantics = [#tpu.dimension_semantics<parallel>], iteration_bounds = array<i64: 2>, scalar_prefetch = 0 : i64, scratch_operands = 0 : i64, tpu.core_type = #tpu.core_type<tc>, window_params = [{transform_indices = @transform_0, window_bounds = array<i64: 256, 256>}, {pipeline_mode = #tpu.pipeline_mode<synchronous>, transform_indices = @transform_1, window_bounds = array<i64: 128, 256>}, {transform_indices = @transform_2, window_bounds = array<i64: 256, 128>}, {transform_indices = @transform_3, window_bounds = array<i64: 256, 256>}]} {
    %c0 = arith.constant 0 : index
    %c0_0 = arith.constant 0 : index
    %0 = vector.load %arg1[%c0, %c0_0] : memref<256x256xf32, #tpu.memory_space<vmem>>, vector<256x256xf32>
    %c0_1 = arith.constant 0 : index
    %c0_2 = arith.constant 0 : index
    %1 = vector.load %arg2[%c0_1, %c0_2] : memref<128x256xf32, #tpu.memory_space<vmem>>, vector<128x256xf32>
    %cst = arith.constant dense<0.000000e+00> : vector<256x128xf32>
    %2 = tpu.matmul %0, %1, %cst {dimension_numbers = #tpu.dot_dimension_numbers<[1], [1], [0], [0], [0, 0, 1, 0], [], []>} : vector<256x256xf32>, vector<128x256xf32>, vector<256x128xf32> -> vector<256x128xf32>
    %cst_3 = arith.constant 0.000000e+00 : f32
    %3 = vector.broadcast %cst_3 : f32 to vector<256x128xf32>
    %4 = arith.maximumf %2, %3 : vector<256x128xf32>
    %c0_4 = arith.constant 0 : index
    %c0_5 = arith.constant 0 : index
    %5 = vector.load %arg3[%c0_4, %c0_5] : memref<256x128xf32, #tpu.memory_space<vmem>>, vector<256x128xf32>
    tpu.vector_store %arg3[%c0_4, %c0_5], %4 {strides = array<i32>} : memref<256x128xf32, #tpu.memory_space<vmem>>, vector<256x128xf32>,
    %cst_6 = arith.constant dense<0.000000e+00> : vector<256x256xf32>
    %6 = tpu.matmul %4, %1, %cst_6 {dimension_numbers = #tpu.dot_dimension_numbers<[1], [0], [0], [1], [0, 0, 1, 1], [], []>} : vector<256x128xf32>, vector<128x256xf32>, vector<256x256xf32> -> vector<256x256xf32>
    %c0_7 = arith.constant 0 : index
    %c0_8 = arith.constant 0 : index
    %7 = vector.load %arg4[%c0_7, %c0_8] : memref<256x256xf32, #tpu.memory_space<vmem>>, vector<256x256xf32>
    tpu.vector_store %arg4[%c0_7, %c0_8], %6 {strides = array<i32>} : memref<256x256xf32, #tpu.memory_space<vmem>>, vector<256x256xf32>,
    return
  }
  func.func @transform_0(%arg0: i32) -> (i32, i32) {
    %c0_i32 = arith.constant 0 : i32
    %c0_i32_0 = arith.constant 0 : i32
    return %arg0, %c0_i32 : i32, i32
  }
  func.func @transform_1(%arg0: i32) -> (i32, i32) {
    %c0_i32 = arith.constant 0 : i32
    %c0_i32_0 = arith.constant 0 : i32
    %c0_i32_1 = arith.constant 0 : i32
    return %c0_i32, %c0_i32_0 : i32, i32
  }
  func.func @transform_2(%arg0: i32) -> (i32, i32) {
    %c0_i32 = arith.constant 0 : i32
    %c0_i32_0 = arith.constant 0 : i32
    return %arg0, %c0_i32 : i32, i32
  }
  func.func @transform_3(%arg0: i32) -> (i32, i32) {
    %c0_i32 = arith.constant 0 : i32
    %c0_i32_0 = arith.constant 0 : i32
    return %arg0, %c0_i32 : i32, i32
  }
}

</mosaic_0001>

<bundles_post_ra>
// kernel: nsaelcn_forward.1
= control target key start
LH: loop header
LB: loop body
LE: loop exit
PB: predicated region body
PF: predicated region fallthrough
CT: control target
= control target key end

     0   :  { %9 = vsyncpa [#allocation3], 0  ;;  %s1873_s0 = inlined_call_operand.hbm [shape: f32[512,256], index: 0, kind: input, shape index: {}]   ;;  %s1874_s1 = inlined_call_operand.hbm [shape: f32[128,256], index: 1, kind: input, shape index: {}]   ;;  %s1875_s2 = inlined_call_operand.hbm [shape: f32[512,128], index: 2, kind: output, shape index: {0}]   ;;  %s1876_s3 = inlined_call_operand.hbm [shape: f32[512,256], index: 3, kind: output, shape index: {1}]  }
   0x1   :  { %11 = vsyncpa [#allocation3 + $0x1], 0 }
   0x2   :  { %12 = vsyncpa [#allocation6], 0 }
   0x3   :  { %13 = vsyncpa [#allocation4], 0 }
   0x4   :  { %15 = vsyncpa [#allocation4 + $0x1], 0 }
   0x5   :  { %16 = vsyncpa [#allocation9], 0 }
   0x6   :  { %18 = vsyncpa [#allocation9 + $0x1], 0  ;;  %s1429_s12 = smov 0   ;;  %s1431_s13 = smov 0  }
   0x7   :  { %s1433_s14 = smov 0   ;;  %s1435_s15 = smov 0  }
   0x8 LB: > { %s1450_s16 = sadd.s32 4294967295, %s1396_s15   ;;  %s1076_s17 = sadd.s32 4294967294, %s1396_s15   ;;  %s1396_s15 = sphi %s1435_s15, %s1896_s15   ;;  %s1392_s14 = sphi %s1433_s14, %s1895_s14   ;;  %s1388_s13 = sphi %s1431_s13, %s1894_s13   ;;  %s1384_s12 = sphi %s1429_s12, %s1893_s12  }
   0x9   : > { %p44_p0 = scmp.ne.s32.totalorder %s1388_s13, %s1384_s12  ;;  %p1877_p1 = scmp.eq.s32.totalorder %s1450_s16, 0 }
   0xa   : > { %p95_p3 = scmp.eq.s32.totalorder %s1076_s17, 1  ;;  %p1077_p5 = scmp.ge.s32.totalorder %s1396_s15, 1 }
   0xb   : > { %p1459_p4 = por %p1877_p1, %p44_p0  ;;  %p128_p7 = scmp.lt.s32.totalorder %s1396_s15, 3 }
   0xc   : > { %p1464_p6 = por %p95_p3, %p44_p0  ;;  %s1398_s21 = smov [#allocation5]  }
   0xd   : > { %s1880_s18 = scalar_select %p1459_p4, 1, 0 }
   0xe   : > { %s1881_s19 = scalar_select %p1464_p6, 1, 0 }
   0xf   : > { %p1469_p8 = pnand %p1077_p5, %p128_p7  ;;  %s140_s22 = sshll.u32 %s1398_s21, 4  ;;  %s1473_s22 = int_to_ptr.vmem [resolvable:$true] %s140_s22 }
  0x10   : > { %s1485_s24 = sadd.s32 1, %s1396_s15   ;;  %s31_s25 = sadd.s32 1, %s1392_s14 }
  0x11   : > { %s1882_s20 = scalar_select %p1469_p8, 1, 0 }
  0x12   : > { %p1177_p9 = pneg %p1469_p8  ;;  %s28_s26 = ssub.s32 %s1396_s15, %s1485_s24 }
  0x13   : > { %s1236_s29 = scalar_lea.hbm %s1874_s1, 4096 }
  0x14   : > { %p1480_p11 = pnand %p1177_p9, %p1877_p1  ;;  %p1237_p12 = scmp.ne.s32.totalorder %s1874_s1, %s1236_s29 }
  0x15   : > { %p1243_p5 = scmp.lt.u32.totalorder %s1236_s29, %s1874_s1 }
  0x16   : > { %p1238_p13 = pneg %p1480_p11 }
  0x18   : > { %p1239_p0 = pnand %p1238_p13, %p1237_p12 }
  0x1a   : > { %p1240_p3 = pneg %p1239_p0 }
  0x1c   : > { %p1245_p7 = pnand %p1243_p5, %p1240_p3 }
  0x1e   : > { %1248 = shalt.err (!%p1245_p7)
}
  0x1f   : > { %s1249_s7 = scalar_lea.vmem %s1473_s22, 4096  ;;  %p1257_p2 = scmp.lt.s32.totalorder %s1473_s22, %s1473_s22 }
  0x20   : > { %p1250_p9 = scmp.ne.s32.totalorder %s1473_s22, %s1249_s7  ;;  %p1258_p6 = scmp.lt.s32.totalorder %s1249_s7, %s1249_s7 }
  0x22   : > { %p1252_p10 = pnand %p1250_p9, %p1238_p13  ;;  %p1259_p4 = por %p1258_p6, %p1257_p2 }
  0x24   : > { %p1253_p1 = pneg %p1252_p10 }
  0x26   : > { %p1260_p8 = pnand %p1259_p4, %p1253_p1 }
  0x28   : > { %1263 = shalt.err (!%p1260_p8)
}
  0x29   : > { %s1399_s8 = smov 256   ;;  %s1400_s9 = smov 16  }
  0x2a   : > { %1180 = dma.hbm_to_vmem [thread:$0]  (!%p1480_p11), %s1874_s1, 4096, %s1473_s22, [#allocation6], %s1399_s8, %s1399_s8, %s1400_s9  }
  0x2b   : > { %p29_p1 = scmp.eq.s32.totalorder %s28_s26, 0  ;;  %p38_p2 = scmp.ne.s32.totalorder %s1392_s14, %s1388_s13 }
  0x2c   : > { %p39_p4 = scmp.eq.s32.totalorder %s1396_s15, 0  ;;  %p1193_p6 = scmp.lt.s32.totalorder %s1396_s15, 2 }
  0x2d   : > { %s1519_s17 = scalar_select %p29_p1, %s1392_s14, %s31_s25  }
  0x2e   : > { %p40_p8 = por %p39_p4, %p38_p2  ;;  %p1884_p10 = scmp.eq.s32.totalorder %s1450_s16, 1 }
  0x2f   : > { %s154_s23 = sand.u32 1, %s1392_s14   ;;  %s1099_s27 = sshll.u32 %s1396_s15, 13 }
  0x30   : > { %p1523_p12 = por %p1884_p10, %p38_p2  ;;  %s1080_s28 = sshll.u32 %s154_s23, 9 }
  0x31   : > { %s1532_s4 = scalar_lea.hbm %s1873_s0, %s1099_s27  ;;  %s158_s22 = scalar_lea.vmem [#allocation2], %s1080_s28 }
  0x32   : > { %s166_s25 = sshll.u32 %s158_s22, 4  ;;  %p1534_p11 = pnand %p1193_p6, %p40_p8  ;;  %s1538_s25 = int_to_ptr.vmem [resolvable:$true] %s166_s25 }
  0x33   : > { %s1540_s5 = scalar_lea.sflag [#allocation3], %s154_s23  ;;  %s1264_s6 = scalar_lea.hbm %s1532_s4, 8192 }
  0x34   : > { %p1265_p13 = scmp.ne.s32.totalorder %s1532_s4, %s1264_s6  ;;  %p1266_p0 = pneg %p1534_p11 }
  0x35   : > { %s1269_s11 = scalar_lea.hbm %s1873_s0, 16384  ;;  %p1270_p7 = scmp.lt.u32.totalorder %s1532_s4, %s1873_s0 }
  0x36   : > { %p1267_p3 = pnand %p1266_p0, %p1265_p13  ;;  %p1271_p9 = scmp.lt.u32.totalorder %s1269_s11, %s1264_s6 }
  0x37   : > { %p1273_p2 = scmp.lt.u32.totalorder %s1264_s6, %s1532_s4 }
  0x38   : > { %p1268_p5 = pneg %p1267_p3  ;;  %p1272_p1 = por %p1271_p9, %p1270_p7 }
  0x3a   : > { %p1274_p4 = por %p1273_p2, %p1272_p1 }
  0x3c   : > { %p1275_p6 = pnand %p1274_p4, %p1268_p5 }
  0x3e   : > { %1278 = shalt.err (!%p1275_p6)
}
  0x3f   : > { %s1279_s23 = scalar_lea.vmem %s1538_s25, 8192  ;;  %s1401_s29 = smov [#allocation2]  }
  0x40   : > { %p1280_p8 = scmp.ne.s32.totalorder %s1538_s25, %s1279_s23  ;;  %s1284_s30 = sshll.u32 %s1401_s29, 4  ;;  %s1285_s30 = int_to_ptr.vmem [resolvable:$false] %s1284_s30 }
  0x41   : > { %s1286_s22 = scalar_lea.vmem %s1285_s30, 16384  ;;  %p1287_p3 = scmp.lt.s32.totalorder %s1538_s25, %s1285_s30 }
  0x42   : > { %p1282_p10 = pnand %p1280_p8, %p1266_p0  ;;  %p1288_p7 = scmp.lt.s32.totalorder %s1286_s22, %s1279_s23 }
  0x44   : > { %p1283_p13 = pneg %p1282_p10  ;;  %p1289_p9 = por %p1288_p7, %p1287_p3 }
  0x46   : > { %p1290_p1 = pnand %p1289_p9, %p1283_p13 }
  0x48   : > { %1293 = shalt.err (!%p1290_p1)
}
  0x49   : > { %1184 = dma.hbm_to_vmem [thread:$0]  (!%p1534_p11), %s1532_s4, 8192, %s1538_s25, %s1540_s5, %s1399_s8, %s1399_s8, %s1400_s9  }
  0x4a   : > { %p1887_p0 = scmp.ne.s32.totalorder %s1882_s20, 0 }
  0x4b   : > { %s1574_s6 = sand.u32 (!%p1887_p0), 1, %s1388_s13   ;;  %p1888_p5 = scmp.ne.s32.totalorder (!%p1887_p0), %s1880_s18, 0 }
  0x4c   : > { %178 = sbr.rel (%p1887_p0) target bundleno = 720 (0x2d0), region = 28  ;;  %s1085_s7 = sshll.u32 (!%p1887_p0), %s1574_s6, 9 }
  0x4d   : > { %s181_s10 = scalar_lea.sflag (!%p1887_p0), [#allocation3], %s1574_s6  ;;  %s1580_s26 = scalar_lea.vmem (!%p1887_p0), [#allocation2], %s1085_s7 }
  0x53   : > { %1367 = dma.done.wait (%p1888_p5), %s181_s10, 8192  }
  0x54   : > { %1369 = vsyncadd (%p1888_p5), %s181_s10, 4294959104  ;;  %p1889_p11 = scmp.eq.s32.totalorder %s1450_s16, 0 }
  0x56   : > { %1371 = dma.done.wait (%p1889_p11), [#allocation6], 4096   ;;  %p1890_p2 = pmov %p1889_p11 }
  0x57   : > { %v284_v0 = vld [vmem:[#allocation5 + $0x8] sm:$0xff]  ;;  %v286_v1 = vld [vmem:[#allocation5 + $0x18] sm:$0xff]  ;;  %v283_v2 = vld [vmem:[#allocation5] sm:$0xff]  ;;  %s1087_s18 = sshll.u32 %s1574_s6, 8  ;;  %s1100_s8 = sshll.u32 %s1450_s16, 12 }
  0x58   : > { %1373 = vsyncadd (%p1890_p2), [#allocation6], 4294963200  ;;  %v1103_v3 = vpack.c.bf16 %v286_v1, %v284_v0  ;;  %v285_v4 = vld [vmem:[#allocation5 + $0x10] sm:$0xff]  ;;  %v288_v5 = vld [vmem:[#allocation5 + $0x28] sm:$0xff]  ;;  %s1656_s20 = scalar_lea.vmem [#allocation7], %s1087_s18  ;;  %s1726_s5 = scalar_lea.hbm %s1875_s2, %s1100_s8 }
  0x59   : > { %v290_v6 = vld [vmem:[#allocation5 + $0x38] sm:$0xff]  ;;  %v1105_v7 = vpack.c.bf16 %v285_v4, %v283_v2  ;;  %v287_v9 = vld [vmem:[#allocation5 + $0x20] sm:$0xff]  ;;  %v289_v10 = vld [vmem:[#allocation5 + $0x30] sm:$0xff]  ;;  %s944_s9 = sshll.u32 %s1656_s20, 4  ;;  %s1732_s11 = scalar_lea.vmem [#allocation8], %s1085_s7  ;;  %s1728_s9 = int_to_ptr.vmem [resolvable:$true] %s944_s9 }
  0x5a   : > { %v1107_v8 = vpack.c.bf16 %v290_v6, %v288_v5  ;;  %1104 = vmatprep.subr.bf16.mxu0 %v1103_v3  ;;  %1136 = vmatprep.subr.bf16.mxu1 %v1103_v3  ;;  %v292_v11 = vld [vmem:[#allocation5 + $0x48] sm:$0xff]  ;;  %v294_v12 = vld [vmem:[#allocation5 + $0x58] sm:$0xff]  ;;  %v1109_v13 = vpack.c.bf16 %v289_v10, %v287_v9  ;;  %v291_v15 = vld [vmem:[#allocation5 + $0x40] sm:$0xff]  ;;  %s926_s27 = scalar_lea.sflag [#allocation4], %s1574_s6  ;;  %s1294_s28 = scalar_lea.vmem %s1728_s9, 4096 }
  0x5b   : > { %1106 = vmatpush1.bf16.xpose.msra.mxu0 %v1105_v7  ;;  %1138 = vmatpush1.bf16.msra.mxu1 %v1105_v7  ;;  %v1111_v14 = vpack.c.bf16 %v294_v12, %v292_v11  ;;  %v293_v16 = vld [vmem:[#allocation5 + $0x50] sm:$0xff]  ;;  %v296_v17 = vld [vmem:[#allocation5 + $0x68] sm:$0xff]  ;;  %v298_v18 = vld [vmem:[#allocation5 + $0x78] sm:$0xff]  ;;  %p1295_p4 = scmp.ne.s32.totalorder %s1728_s9, %s1294_s28  ;;  %s1403_s23 = smov [#allocation7]  }
  0x5c   : > { %1108 = vmatprep.subr.bf16.mxu0 %v1107_v8  ;;  %1140 = vmatprep.subr.bf16.mxu1 %v1107_v8  ;;  %v1113_v19 = vpack.c.bf16 %v293_v16, %v291_v15  ;;  %v220_v20 = vld [vmem:[%s1580_s26 + $0x8] sm:$0xff]  ;;  %v1115_v21 = vpack.c.bf16 %v298_v18, %v296_v17  ;;  %v295_v22 = vld [vmem:[#allocation5 + $0x60] sm:$0xff]  ;;  %v297_v23 = vld [vmem:[#allocation5 + $0x70] sm:$0xff]  ;;  %s1298_s29 = sshll.u32 %s1403_s23, 4  ;;  %s1299_s29 = int_to_ptr.vmem [resolvable:$false] %s1298_s29 }
  0x5d   : > { %379 = vmatprep.mubr.f32.mxu0 %v220_v20  ;;  %v300_v24 = vld [vmem:[#allocation5 + $0x88] sm:$0xff]  ;;  %v302_v25 = vld [vmem:[#allocation5 + $0x98] sm:$0xff]  ;;  %v1117_v26 = vpack.c.bf16 %v297_v23, %v295_v22  ;;  %v299_v28 = vld [vmem:[#allocation5 + $0x80] sm:$0xff]  ;;  %p1296_p6 = pnand %p1295_p4, %p1523_p12  ;;  %s1300_s30 = scalar_lea.vmem %s1299_s29, 8192 }
  0x5e   : > { %v1119_v27 = vpack.c.bf16 %v302_v25, %v300_v24  ;;  %v301_v29 = vld [vmem:[#allocation5 + $0x90] sm:$0xff]  ;;  %v304_v30 = vld [vmem:[#allocation5 + $0xa8] sm:$0xff]  ;;  %v306_v31 = vld [vmem:[#allocation5 + $0xb8] sm:$0xff]  ;;  %p1301_p10 = scmp.lt.s32.totalorder %s1728_s9, %s1299_s29  ;;  %p1302_p13 = scmp.lt.s32.totalorder %s1300_s30, %s1294_s28 }
  0x5f   : > { %1142 = vmatpush1.bf16.msra.mxu1 %v1109_v13  ;;  %v1121_v32 = vpack.c.bf16 %v301_v29, %v299_v28  ;;  %v1123_v33 = vpack.c.bf16 %v306_v31, %v304_v30  ;;  %v303_v34 = vld [vmem:[#allocation5 + $0xa0] sm:$0xff]  ;;  %v305_v35 = vld [vmem:[#allocation5 + $0xb0] sm:$0xff]  ;;  %v308_v36 = vld [vmem:[#allocation5 + $0xc8] sm:$0xff]  ;;  %v1402_v30 = vmov 0.0   ;;  %p1297_p8 = pneg %p1296_p6 }
  0x60   : > { %1144 = vmatprep.subr.bf16.mxu1 %v1111_v14  ;;  %v310_v37 = vld [vmem:[#allocation5 + $0xd8] sm:$0xff]  ;;  %v1125_v38 = vpack.c.bf16 %v305_v35, %v303_v34  ;;  %v307_v40 = vld [vmem:[#allocation5 + $0xc0] sm:$0xff]  ;;  %v309_v41 = vld [vmem:[#allocation5 + $0xd0] sm:$0xff]  ;;  %668 = vmatprep.mubr.f32.mxu1 %v1402_v30  ;;  %p1303_p3 = por %p1302_p13, %p1301_p10 }
  0x61   : > { %v1127_v39 = vpack.c.bf16 %v310_v37, %v308_v36  ;;  %v312_v42 = vld [vmem:[#allocation5 + $0xe8] sm:$0xff]  ;;  %v314_v43 = vld [vmem:[#allocation5 + $0xf8] sm:$0xff]  ;;  %v1129_v44 = vpack.c.bf16 %v309_v41, %v307_v40  ;;  %v311_v46 = vld [vmem:[#allocation5 + $0xe0] sm:$0xff] }
  0x62   : > { %v1131_v45 = vpack.c.bf16 %v314_v43, %v312_v42  ;;  %v313_v47 = vld [vmem:[#allocation5 + $0xf0] sm:$0xff]  ;;  %v219_v49 = vld [vmem:[%s1580_s26] sm:$0xff]  ;;  %v222_v50 = vld [vmem:[%s1580_s26 + $0x18] sm:$0xff]  ;;  %p1304_p7 = pnand %p1303_p3, %p1297_p8 }
  0x63   : > { %1110 = vmatpush1.bf16.xpose.msra.mxu0 %v1109_v13  ;;  %1146 = vmatpush1.bf16.msra.mxu1 %v1113_v19  ;;  %v1133_v48 = vpack.c.bf16 %v313_v47, %v311_v46  ;;  %v221_v51 = vld [vmem:[%s1580_s26 + $0x10] sm:$0xff]  ;;  %v224_v52 = vld [vmem:[%s1580_s26 + $0x28] sm:$0xff]  ;;  %v223_v53 = vld [vmem:[%s1580_s26 + $0x20] sm:$0xff] }
  0x64   : > { %1112 = vmatprep.subr.bf16.mxu0 %v1111_v14  ;;  %1148 = vmatprep.subr.bf16.mxu1 %v1115_v21  ;;  %v226_v54 = vld [vmem:[%s1580_s26 + $0x38] sm:$0xff]  ;;  %v225_v55 = vld [vmem:[%s1580_s26 + $0x30] sm:$0xff]  ;;  %v228_v56 = vld [vmem:[%s1580_s26 + $0x48] sm:$0xff] }
  0x65   : > { %v227_v57 = vld [vmem:[%s1580_s26 + $0x40] sm:$0xff]  ;;  %v230_v58 = vld [vmem:[%s1580_s26 + $0x58] sm:$0xff]  ;;  %v229_v59 = vld [vmem:[%s1580_s26 + $0x50] sm:$0xff] }
  0x66   : > { %v232_v60 = vld [vmem:[%s1580_s26 + $0x68] sm:$0xff]  ;;  %v231_v61 = vld [vmem:[%s1580_s26 + $0x60] sm:$0xff]  ;;  %v234_v62 = vld [vmem:[%s1580_s26 + $0x78] sm:$0xff] }
  0x67   : > { %1150 = vmatpush1.bf16.msra.mxu1 %v1117_v26  ;;  %v233_v63 = vld [vmem:[%s1580_s26 + $0x70] sm:$0xff]  ;;  %v236_v0 = vld [vmem:[%s1580_s26 + $0x88] sm:$0xff]  ;;  %v235_v1 = vld [vmem:[%s1580_s26 + $0x80] sm:$0xff] }
  0x68   : > { %1152 = vmatprep.subr.bf16.mxu1 %v1119_v27  ;;  %v238_v2 = vld [vmem:[%s1580_s26 + $0x98] sm:$0xff]  ;;  %v237_v3 = vld [vmem:[%s1580_s26 + $0x90] sm:$0xff]  ;;  %v240_v4 = vld [vmem:[%s1580_s26 + $0xa8] sm:$0xff] }
  0x69   : > { %v239_v5 = vld [vmem:[%s1580_s26 + $0xa0] sm:$0xff]  ;;  %v242_v6 = vld [vmem:[%s1580_s26 + $0xb8] sm:$0xff]  ;;  %v241_v7 = vld [vmem:[%s1580_s26 + $0xb0] sm:$0xff] }
  0x6a   : > { %v244_v8 = vld [vmem:[%s1580_s26 + $0xc8] sm:$0xff]  ;;  %v243_v9 = vld [vmem:[%s1580_s26 + $0xc0] sm:$0xff]  ;;  %v246_v10 = vld [vmem:[%s1580_s26 + $0xd8] sm:$0xff] }
  0x6b   : > { %1114 = vmatpush1.bf16.xpose.msra.mxu0 %v1113_v19  ;;  %1154 = vmatpush1.bf16.msra.mxu1 %v1121_v32  ;;  %v245_v11 = vld [vmem:[%s1580_s26 + $0xd0] sm:$0xff]  ;;  %v248_v12 = vld [vmem:[%s1580_s26 + $0xe8] sm:$0xff]  ;;  %v247_v13 = vld [vmem:[%s1580_s26 + $0xe0] sm:$0xff] }
  0x6c   : > { %1116 = vmatprep.subr.bf16.mxu0 %v1115_v21  ;;  %1156 = vmatprep.subr.bf16.mxu1 %v1123_v33  ;;  %v250_v14 = vld [vmem:[%s1580_s26 + $0xf8] sm:$0xff]  ;;  %v249_v15 = vld [vmem:[%s1580_s26 + $0xf0] sm:$0xff]  ;;  %v252_v16 = vld [vmem:[%s1580_s26 + $0x108] sm:$0xff] }
  0x6d   : > { %v251_v17 = vld [vmem:[%s1580_s26 + $0x100] sm:$0xff]  ;;  %v254_v18 = vld [vmem:[%s1580_s26 + $0x118] sm:$0xff]  ;;  %v253_v19 = vld [vmem:[%s1580_s26 + $0x110] sm:$0xff] }
  0x6e   : > { %v256_v20 = vld [vmem:[%s1580_s26 + $0x128] sm:$0xff]  ;;  %v255_v21 = vld [vmem:[%s1580_s26 + $0x120] sm:$0xff]  ;;  %v258_v22 = vld [vmem:[%s1580_s26 + $0x138] sm:$0xff] }
  0x6f   : > { %1158 = vmatpush1.bf16.msra.mxu1 %v1125_v38  ;;  %v257_v23 = vld [vmem:[%s1580_s26 + $0x130] sm:$0xff]  ;;  %v260_v24 = vld [vmem:[%s1580_s26 + $0x148] sm:$0xff]  ;;  %v259_v25 = vld [vmem:[%s1580_s26 + $0x140] sm:$0xff] }
  0x70   : > { %1160 = vmatprep.subr.bf16.mxu1 %v1127_v39  ;;  %v264_v28 = vld [vmem:[%s1580_s26 + $0x168] sm:$0xff]  ;;  %v263_v29 = vld [vmem:[%s1580_s26 + $0x160] sm:$0xff]  ;;  %v266_v31 = vld [vmem:[%s1580_s26 + $0x178] sm:$0xff] }
  0x71   : > { %v267_v34 = vld [vmem:[%s1580_s26 + $0x180] sm:$0xff]  ;;  %v270_v35 = vld [vmem:[%s1580_s26 + $0x198] sm:$0xff]  ;;  %v269_v36 = vld [vmem:[%s1580_s26 + $0x190] sm:$0xff] }
  0x72   : > { %v272_v37 = vld [vmem:[%s1580_s26 + $0x1a8] sm:$0xff]  ;;  %v273_v40 = vld [vmem:[%s1580_s26 + $0x1b0] sm:$0xff]  ;;  %v275_v42 = vld [vmem:[%s1580_s26 + $0x1c0] sm:$0xff] }
  0x73   : > { %1118 = vmatpush1.bf16.xpose.msra.mxu0 %v1117_v26  ;;  %1162 = vmatpush1.bf16.msra.mxu1 %v1129_v44  ;;  %v262_v26 = vld [vmem:[%s1580_s26 + $0x158] sm:$0xff]  ;;  %v276_v41 = vld [vmem:[%s1580_s26 + $0x1c8] sm:$0xff]  ;;  %v279_v46 = vld [vmem:[%s1580_s26 + $0x1e0] sm:$0xff] }
  0x74   : > { %1120 = vmatprep.subr.bf16.mxu0 %v1119_v27  ;;  %1164 = vmatprep.subr.bf16.mxu1 %v1131_v45  ;;  %v261_v27 = vld [vmem:[%s1580_s26 + $0x150] sm:$0xff]  ;;  %v278_v43 = vld [vmem:[%s1580_s26 + $0x1d8] sm:$0xff] }
  0x75   : > { %v282_v47 = vld [vmem:[%s1580_s26 + $0x1f8] sm:$0xff] }
  0x77   : > { %1166 = vmatpush1.bf16.msra.mxu1 %v1133_v48 }
  0x7b   : > { %1122 = vmatpush1.bf16.xpose.msra.mxu0 %v1121_v32  ;;  %v265_v32 = vld [vmem:[%s1580_s26 + $0x170] sm:$0xff] }
  0x7c   : > { %1124 = vmatprep.subr.bf16.mxu0 %v1123_v33  ;;  %v268_v33 = vld [vmem:[%s1580_s26 + $0x188] sm:$0xff] }
  0x83   : > { %1126 = vmatpush1.bf16.xpose.msra.mxu0 %v1125_v38  ;;  %v271_v38 = vld [vmem:[%s1580_s26 + $0x1a0] sm:$0xff] }
  0x84   : > { %1128 = vmatprep.subr.bf16.mxu0 %v1127_v39  ;;  %v274_v39 = vld [vmem:[%s1580_s26 + $0x1b8] sm:$0xff] }
  0x8b   : > { %1130 = vmatpush1.bf16.xpose.msra.mxu0 %v1129_v44  ;;  %v277_v44 = vld [vmem:[%s1580_s26 + $0x1d0] sm:$0xff] }
  0x8c   : > { %1132 = vmatprep.subr.bf16.mxu0 %v1131_v45  ;;  %v280_v45 = vld [vmem:[%s1580_s26 + $0x1e8] sm:$0xff] }
  0x93   : > { %1134 = vmatpush1.bf16.xpose.msra.mxu0 %v1133_v48  ;;  %v281_v48 = vld [vmem:[%s1580_s26 + $0x1f0] sm:$0xff] }
  0x9a   : > { %380 = vmatmul.mubr.f32.vlgmr.msra.gmra.mrb[0].mxu0 %v219_v49 }
  0x9b   : > { %384 = vmatprep.mubr.f32.mxu0 %v222_v50 }
  0x9e   : > { %385 = vmatmul.mubr.f32.gmra.mrb[2].mxu0 %v221_v51 }
  0x9f   : > { %389 = vmatprep.mubr.f32.mxu0 %v224_v52 }
  0xa2   : > { %390 = vmatmul.mubr.f32.gmra.mrb[4].mxu0 %v223_v53 }
  0xa3   : > { %394 = vmatprep.mubr.f32.mxu0 %v226_v54 }
  0xa6   : > { %395 = vmatmul.mubr.f32.gmra.mrb[6].mxu0 %v225_v55 }
  0xa7   : > { %399 = vmatprep.mubr.f32.mxu0 %v228_v56 }
  0xaa   : > { %400 = vmatmul.mubr.f32.gmra.mrb[8].mxu0 %v227_v57 }
  0xab   : > { %404 = vmatprep.mubr.f32.mxu0 %v230_v58 }
  0xae   : > { %405 = vmatmul.mubr.f32.gmra.mrb[10].mxu0 %v229_v59 }
  0xaf   : > { %409 = vmatprep.mubr.f32.mxu0 %v232_v60 }
  0xb2   : > { %410 = vmatmul.mubr.f32.gmra.mrb[12].mxu0 %v231_v61 }
  0xb3   : > { %414 = vmatprep.mubr.f32.mxu0 %v234_v62 }
  0xb6   : > { %415 = vmatmul.mubr.f32.gmra.mrb[14].mxu0 %v233_v63 }
  0xb7   : > { %419 = vmatprep.mubr.f32.mxu0 %v236_v0 }
  0xba   : > { %420 = vmatmul.mubr.f32.gmra.mrb[16].mxu0 %v235_v1 }
  0xbb   : > { %424 = vmatprep.mubr.f32.mxu0 %v238_v2 }
  0xbe   : > { %425 = vmatmul.mubr.f32.gmra.mrb[18].mxu0 %v237_v3 }
  0xbf   : > { %429 = vmatprep.mubr.f32.mxu0 %v240_v4 }
  0xc2   : > { %430 = vmatmul.mubr.f32.gmra.mrb[20].mxu0 %v239_v5 }
  0xc3   : > { %434 = vmatprep.mubr.f32.mxu0 %v242_v6 }
  0xc6   : > { %435 = vmatmul.mubr.f32.gmra.mrb[22].mxu0 %v241_v7 }
  0xc7   : > { %439 = vmatprep.mubr.f32.mxu0 %v244_v8 }
  0xca   : > { %440 = vmatmul.mubr.f32.gmra.mrb[24].mxu0 %v243_v9 }
  0xcb   : > { %444 = vmatprep.mubr.f32.mxu0 %v246_v10 }
  0xce   : > { %445 = vmatmul.mubr.f32.gmra.mrb[26].mxu0 %v245_v11 }
  0xcf   : > { %449 = vmatprep.mubr.f32.mxu0 %v248_v12 }
  0xd2   : > { %450 = vmatmul.mubr.f32.gmra.mrb[28].mxu0 %v247_v13 }
  0xd3   : > { %454 = vmatprep.mubr.f32.mxu0 %v250_v14 }
  0xd6   : > { %455 = vmatmul.mubr.f32.gmra.mrb[30].mxu0 %v249_v15 }
  0xd7   : > { %459 = vmatprep.mubr.f32.mxu0 %v252_v16 }
  0xda   : > { %460 = vmatmul.mubr.f32.gmra.mrb[32].mxu0 %v251_v17 }
  0xdb   : > { %464 = vmatprep.mubr.f32.mxu0 %v254_v18 }
  0xde   : > { %465 = vmatmul.mubr.f32.gmra.mrb[34].mxu0 %v253_v19 }
  0xdf   : > { %469 = vmatprep.mubr.f32.mxu0 %v256_v20 }
  0xe2   : > { %470 = vmatmul.mubr.f32.gmra.mrb[36].mxu0 %v255_v21 }
  0xe3   : > { %474 = vmatprep.mubr.f32.mxu0 %v258_v22 }
  0xe6   : > { %475 = vmatmul.mubr.f32.gmra.mrb[38].mxu0 %v257_v23 }
  0xe7   : > { %479 = vmatprep.mubr.f32.mxu0 %v260_v24 }
  0xea   : > { %480 = vmatmul.mubr.f32.gmra.mrb[40].mxu0 %v259_v25 }
  0xeb   : > { %484 = vmatprep.mubr.f32.mxu0 %v262_v26 }
  0xee   : > { %485 = vmatmul.mubr.f32.gmra.mrb[42].mxu0 %v261_v27 }
  0xef   : > { %489 = vmatprep.mubr.f32.mxu0 %v264_v28 }
  0xf2   : > { %490 = vmatmul.mubr.f32.gmra.mrb[44].mxu0 %v263_v29 }
  0xf3   : > { %494 = vmatprep.mubr.f32.mxu0 %v266_v31 }
  0xf6   : > { %495 = vmatmul.mubr.f32.gmra.mrb[46].mxu0 %v265_v32 }
  0xf7   : > { %499 = vmatprep.mubr.f32.mxu0 %v268_v33 }
  0xfa   : > { %500 = vmatmul.mubr.f32.gmra.mrb[48].mxu0 %v267_v34 }
  0xfb   : > { %504 = vmatprep.mubr.f32.mxu0 %v270_v35 }
  0xfe   : > { %505 = vmatmul.mubr.f32.gmra.mrb[50].mxu0 %v269_v36 }
  0xff   : > { %509 = vmatprep.mubr.f32.mxu0 %v272_v37 }
 0x102   : > { %510 = vmatmul.mubr.f32.gmra.mrb[52].mxu0 %v271_v38 }
 0x103   : > { %514 = vmatprep.mubr.f32.mxu0 %v274_v39 }
 0x106   : > { %515 = vmatmul.mubr.f32.gmra.mrb[54].mxu0 %v273_v40 }
 0x107   : > { %519 = vmatprep.mubr.f32.mxu0 %v276_v41 }
 0x10a   : > { %520 = vmatmul.mubr.f32.gmra.mrb[56].mxu0 %v275_v42 }
 0x10b   : > { %524 = vmatprep.mubr.f32.mxu0 %v278_v43 }
 0x10e   : > { %525 = vmatmul.mubr.f32.gmra.mrb[58].mxu0 %v277_v44 }
 0x10f   : > { %529 = vmatprep.mubr.f32.mxu0 %v280_v45 }
 0x112   : > { %530 = vmatmul.mubr.f32.gmra.mrb[60].mxu0 %v279_v46 }
 0x113   : > { %534 = vmatprep.mubr.f32.mxu0 %v282_v47 }
 0x116   : > { %535 = vmatmul.mubr.f32.gmra.mrb[62].mxu0 %v281_v48 }
 0x16d   : > { %v381_v49 = vpop.f32.mrb[0].mxu0 }
 0x16e   : > { %v540_v50 = vmax.f32 %v381_v49, 0.0  ;;  %v383_v51 = vpop.f32.mrb[1].mxu0 }
 0x170   : > { %572 = vst [vmem:[%s1656_s20] sm:$0xff] %v540_v50  ;;  %669 = vmatmul.mubr.f32.vlgmr.msra.gmra.mrb[0].mxu1 %v540_v50 }
 0x171   : > { %v386_v52 = vpop.f32.mrb[2].mxu0  ;;  %674 = vmatprep.mubr.f32.mxu1 %v1402_v30 }
 0x172   : > { %v541_v53 = vmax.f32 %v386_v52, 0.0  ;;  %v388_v54 = vpop.f32.mrb[3].mxu0 }
 0x174   : > { %573 = vst [vmem:[%s1656_s20 + $0x8] sm:$0xff] %v541_v53  ;;  %675 = vmatmul.mubr.f32.gmra.mrb[2].mxu1 %v541_v53 }
 0x175   : > { %v391_v55 = vpop.f32.mrb[4].mxu0  ;;  %680 = vmatprep.mubr.f32.mxu1 %v1402_v30 }
 0x176   : > { %v542_v56 = vmax.f32 %v391_v55, 0.0  ;;  %v393_v57 = vpop.f32.mrb[5].mxu0 }
 0x178   : > { %574 = vst [vmem:[%s1656_s20 + $0x10] sm:$0xff] %v542_v56  ;;  %681 = vmatmul.mubr.f32.gmra.mrb[4].mxu1 %v542_v56 }
 0x179   : > { %v396_v58 = vpop.f32.mrb[6].mxu0  ;;  %686 = vmatprep.mubr.f32.mxu1 %v1402_v30 }
 0x17a   : > { %v543_v59 = vmax.f32 %v396_v58, 0.0  ;;  %v398_v60 = vpop.f32.mrb[7].mxu0 }
 0x17c   : > { %575 = vst [vmem:[%s1656_s20 + $0x18] sm:$0xff] %v543_v59  ;;  %687 = vmatmul.mubr.f32.gmra.mrb[6].mxu1 %v543_v59 }
 0x17d   : > { %v401_v61 = vpop.f32.mrb[8].mxu0  ;;  %692 = vmatprep.mubr.f32.mxu1 %v1402_v30 }
 0x17e   : > { %v544_v62 = vmax.f32 %v401_v61, 0.0  ;;  %v403_v63 = vpop.f32.mrb[9].mxu0 }
 0x180   : > { %576 = vst [vmem:[%s1656_s20 + $0x20] sm:$0xff] %v544_v62  ;;  %693 = vmatmul.mubr.f32.gmra.mrb[8].mxu1 %v544_v62 }
 0x181   : > { %v406_v0 = vpop.f32.mrb[10].mxu0  ;;  %698 = vmatprep.mubr.f32.mxu1 %v1402_v30 }
 0x182   : > { %v545_v1 = vmax.f32 %v406_v0, 0.0  ;;  %v408_v2 = vpop.f32.mrb[11].mxu0 }
 0x184   : > { %577 = vst [vmem:[%s1656_s20 + $0x28] sm:$0xff] %v545_v1  ;;  %699 = vmatmul.mubr.f32.gmra.mrb[10].mxu1 %v545_v1 }
 0x185   : > { %v411_v3 = vpop.f32.mrb[12].mxu0  ;;  %704 = vmatprep.mubr.f32.mxu1 %v1402_v30 }
 0x186   : > { %v546_v4 = vmax.f32 %v411_v3, 0.0  ;;  %v413_v5 = vpop.f32.mrb[13].mxu0 }
 0x188   : > { %578 = vst [vmem:[%s1656_s20 + $0x30] sm:$0xff] %v546_v4  ;;  %705 = vmatmul.mubr.f32.gmra.mrb[12].mxu1 %v546_v4 }
 0x189   : > { %v416_v6 = vpop.f32.mrb[14].mxu0  ;;  %710 = vmatprep.mubr.f32.mxu1 %v1402_v30 }
 0x18a   : > { %v547_v7 = vmax.f32 %v416_v6, 0.0  ;;  %v418_v8 = vpop.f32.mrb[15].mxu0 }
 0x18c   : > { %579 = vst [vmem:[%s1656_s20 + $0x38] sm:$0xff] %v547_v7  ;;  %711 = vmatmul.mubr.f32.gmra.mrb[14].mxu1 %v547_v7 }
 0x18d   : > { %v421_v9 = vpop.f32.mrb[16].mxu0  ;;  %716 = vmatprep.mubr.f32.mxu1 %v1402_v30 }
 0x18e   : > { %v548_v10 = vmax.f32 %v421_v9, 0.0  ;;  %v423_v11 = vpop.f32.mrb[17].mxu0 }
 0x190   : > { %580 = vst [vmem:[%s1656_s20 + $0x40] sm:$0xff] %v548_v10  ;;  %717 = vmatmul.mubr.f32.gmra.mrb[16].mxu1 %v548_v10 }
 0x191   : > { %v426_v12 = vpop.f32.mrb[18].mxu0  ;;  %722 = vmatprep.mubr.f32.mxu1 %v1402_v30 }
 0x192   : > { %v549_v13 = vmax.f32 %v426_v12, 0.0  ;;  %v428_v14 = vpop.f32.mrb[19].mxu0 }
 0x194   : > { %581 = vst [vmem:[%s1656_s20 + $0x48] sm:$0xff] %v549_v13  ;;  %723 = vmatmul.mubr.f32.gmra.mrb[18].mxu1 %v549_v13 }
 0x195   : > { %v431_v15 = vpop.f32.mrb[20].mxu0  ;;  %728 = vmatprep.mubr.f32.mxu1 %v1402_v30 }
 0x196   : > { %v550_v16 = vmax.f32 %v431_v15, 0.0  ;;  %v433_v17 = vpop.f32.mrb[21].mxu0 }
 0x198   : > { %582 = vst [vmem:[%s1656_s20 + $0x50] sm:$0xff] %v550_v16  ;;  %729 = vmatmul.mubr.f32.gmra.mrb[20].mxu1 %v550_v16 }
 0x199   : > { %v436_v18 = vpop.f32.mrb[22].mxu0  ;;  %734 = vmatprep.mubr.f32.mxu1 %v1402_v30 }
 0x19a   : > { %v551_v19 = vmax.f32 %v436_v18, 0.0  ;;  %v438_v20 = vpop.f32.mrb[23].mxu0 }
 0x19c   : > { %583 = vst [vmem:[%s1656_s20 + $0x58] sm:$0xff] %v551_v19  ;;  %735 = vmatmul.mubr.f32.gmra.mrb[22].mxu1 %v551_v19 }
 0x19d   : > { %v441_v21 = vpop.f32.mrb[24].mxu0  ;;  %740 = vmatprep.mubr.f32.mxu1 %v1402_v30 }
 0x19e   : > { %v552_v22 = vmax.f32 %v441_v21, 0.0  ;;  %v443_v23 = vpop.f32.mrb[25].mxu0 }
 0x1a0   : > { %584 = vst [vmem:[%s1656_s20 + $0x60] sm:$0xff] %v552_v22  ;;  %741 = vmatmul.mubr.f32.gmra.mrb[24].mxu1 %v552_v22 }
 0x1a1   : > { %v446_v24 = vpop.f32.mrb[26].mxu0  ;;  %746 = vmatprep.mubr.f32.mxu1 %v1402_v30 }
 0x1a2   : > { %v553_v25 = vmax.f32 %v446_v24, 0.0  ;;  %v448_v26 = vpop.f32.mrb[27].mxu0 }
 0x1a4   : > { %585 = vst [vmem:[%s1656_s20 + $0x68] sm:$0xff] %v553_v25  ;;  %747 = vmatmul.mubr.f32.gmra.mrb[26].mxu1 %v553_v25 }
 0x1a5   : > { %v451_v27 = vpop.f32.mrb[28].mxu0  ;;  %752 = vmatprep.mubr.f32.mxu1 %v1402_v30 }
 0x1a6   : > { %v554_v28 = vmax.f32 %v451_v27, 0.0  ;;  %v453_v29 = vpop.f32.mrb[29].mxu0 }
 0x1a8   : > { %586 = vst [vmem:[%s1656_s20 + $0x70] sm:$0xff] %v554_v28  ;;  %753 = vmatmul.mubr.f32.gmra.mrb[28].mxu1 %v554_v28 }
 0x1a9   : > { %v456_v31 = vpop.f32.mrb[30].mxu0  ;;  %758 = vmatprep.mubr.f32.mxu1 %v1402_v30 }
 0x1aa   : > { %v555_v32 = vmax.f32 %v456_v31, 0.0  ;;  %v458_v33 = vpop.f32.mrb[31].mxu0 }
 0x1ac   : > { %587 = vst [vmem:[%s1656_s20 + $0x78] sm:$0xff] %v555_v32  ;;  %759 = vmatmul.mubr.f32.gmra.mrb[30].mxu1 %v555_v32 }
 0x1ad   : > { %v461_v34 = vpop.f32.mrb[32].mxu0  ;;  %764 = vmatprep.mubr.f32.mxu1 %v1402_v30 }
 0x1ae   : > { %v556_v35 = vmax.f32 %v461_v34, 0.0  ;;  %v463_v36 = vpop.f32.mrb[33].mxu0 }
 0x1b0   : > { %588 = vst [vmem:[%s1656_s20 + $0x80] sm:$0xff] %v556_v35  ;;  %765 = vmatmul.mubr.f32.gmra.mrb[32].mxu1 %v556_v35 }
 0x1b1   : > { %v466_v37 = vpop.f32.mrb[34].mxu0  ;;  %770 = vmatprep.mubr.f32.mxu1 %v1402_v30 }
 0x1b2   : > { %v557_v38 = vmax.f32 %v466_v37, 0.0  ;;  %v468_v39 = vpop.f32.mrb[35].mxu0 }
 0x1b4   : > { %589 = vst [vmem:[%s1656_s20 + $0x88] sm:$0xff] %v557_v38  ;;  %771 = vmatmul.mubr.f32.gmra.mrb[34].mxu1 %v557_v38 }
 0x1b5   : > { %v471_v40 = vpop.f32.mrb[36].mxu0  ;;  %776 = vmatprep.mubr.f32.mxu1 %v1402_v30 }
 0x1b6   : > { %v558_v41 = vmax.f32 %v471_v40, 0.0  ;;  %v473_v42 = vpop.f32.mrb[37].mxu0 }
 0x1b8   : > { %590 = vst [vmem:[%s1656_s20 + $0x90] sm:$0xff] %v558_v41  ;;  %777 = vmatmul.mubr.f32.gmra.mrb[36].mxu1 %v558_v41 }
 0x1b9   : > { %v476_v43 = vpop.f32.mrb[38].mxu0  ;;  %782 = vmatprep.mubr.f32.mxu1 %v1402_v30 }
 0x1ba   : > { %v559_v44 = vmax.f32 %v476_v43, 0.0  ;;  %v478_v45 = vpop.f32.mrb[39].mxu0 }
 0x1bc   : > { %591 = vst [vmem:[%s1656_s20 + $0x98] sm:$0xff] %v559_v44  ;;  %783 = vmatmul.mubr.f32.gmra.mrb[38].mxu1 %v559_v44 }
 0x1bd   : > { %v481_v46 = vpop.f32.mrb[40].mxu0  ;;  %788 = vmatprep.mubr.f32.mxu1 %v1402_v30 }
 0x1be   : > { %v560_v47 = vmax.f32 %v481_v46, 0.0  ;;  %v483_v48 = vpop.f32.mrb[41].mxu0 }
 0x1c0   : > { %592 = vst [vmem:[%s1656_s20 + $0xa0] sm:$0xff] %v560_v47  ;;  %789 = vmatmul.mubr.f32.gmra.mrb[40].mxu1 %v560_v47 }
 0x1c1   : > { %v486_v49 = vpop.f32.mrb[42].mxu0  ;;  %794 = vmatprep.mubr.f32.mxu1 %v1402_v30 }
 0x1c2   : > { %v561_v50 = vmax.f32 %v486_v49, 0.0  ;;  %v488_v51 = vpop.f32.mrb[43].mxu0 }
 0x1c4   : > { %593 = vst [vmem:[%s1656_s20 + $0xa8] sm:$0xff] %v561_v50  ;;  %795 = vmatmul.mubr.f32.gmra.mrb[42].mxu1 %v561_v50 }
 0x1c5   : > { %v491_v52 = vpop.f32.mrb[44].mxu0  ;;  %800 = vmatprep.mubr.f32.mxu1 %v1402_v30 }
 0x1c6   : > { %v562_v53 = vmax.f32 %v491_v52, 0.0  ;;  %v493_v54 = vpop.f32.mrb[45].mxu0 }
 0x1c8   : > { %594 = vst [vmem:[%s1656_s20 + $0xb0] sm:$0xff] %v562_v53  ;;  %801 = vmatmul.mubr.f32.gmra.mrb[44].mxu1 %v562_v53 }
 0x1c9   : > { %v496_v55 = vpop.f32.mrb[46].mxu0  ;;  %806 = vmatprep.mubr.f32.mxu1 %v1402_v30 }
 0x1ca   : > { %v563_v56 = vmax.f32 %v496_v55, 0.0  ;;  %v498_v57 = vpop.f32.mrb[47].mxu0 }
 0x1cc   : > { %595 = vst [vmem:[%s1656_s20 + $0xb8] sm:$0xff] %v563_v56  ;;  %807 = vmatmul.mubr.f32.gmra.mrb[46].mxu1 %v563_v56 }
 0x1cd   : > { %v501_v58 = vpop.f32.mrb[48].mxu0  ;;  %812 = vmatprep.mubr.f32.mxu1 %v1402_v30 }
 0x1ce   : > { %v564_v59 = vmax.f32 %v501_v58, 0.0  ;;  %v503_v60 = vpop.f32.mrb[49].mxu0 }
 0x1d0   : > { %596 = vst [vmem:[%s1656_s20 + $0xc0] sm:$0xff] %v564_v59  ;;  %813 = vmatmul.mubr.f32.gmra.mrb[48].mxu1 %v564_v59 }
 0x1d1   : > { %v506_v61 = vpop.f32.mrb[50].mxu0  ;;  %818 = vmatprep.mubr.f32.mxu1 %v1402_v30 }
 0x1d2   : > { %v565_v62 = vmax.f32 %v506_v61, 0.0  ;;  %v508_v63 = vpop.f32.mrb[51].mxu0 }
 0x1d4   : > { %597 = vst [vmem:[%s1656_s20 + $0xc8] sm:$0xff] %v565_v62  ;;  %819 = vmatmul.mubr.f32.gmra.mrb[50].mxu1 %v565_v62 }
 0x1d5   : > { %v511_v0 = vpop.f32.mrb[52].mxu0  ;;  %824 = vmatprep.mubr.f32.mxu1 %v1402_v30 }
 0x1d6   : > { %v566_v1 = vmax.f32 %v511_v0, 0.0  ;;  %v513_v2 = vpop.f32.mrb[53].mxu0 }
 0x1d8   : > { %598 = vst [vmem:[%s1656_s20 + $0xd0] sm:$0xff] %v566_v1  ;;  %825 = vmatmul.mubr.f32.gmra.mrb[52].mxu1 %v566_v1 }
 0x1d9   : > { %v516_v3 = vpop.f32.mrb[54].mxu0  ;;  %830 = vmatprep.mubr.f32.mxu1 %v1402_v30 }
 0x1da   : > { %v567_v4 = vmax.f32 %v516_v3, 0.0  ;;  %v518_v5 = vpop.f32.mrb[55].mxu0 }
 0x1dc   : > { %599 = vst [vmem:[%s1656_s20 + $0xd8] sm:$0xff] %v567_v4  ;;  %831 = vmatmul.mubr.f32.gmra.mrb[54].mxu1 %v567_v4 }
 0x1dd   : > { %v521_v6 = vpop.f32.mrb[56].mxu0  ;;  %836 = vmatprep.mubr.f32.mxu1 %v1402_v30 }
 0x1de   : > { %v568_v7 = vmax.f32 %v521_v6, 0.0  ;;  %v523_v8 = vpop.f32.mrb[57].mxu0 }
 0x1e0   : > { %600 = vst [vmem:[%s1656_s20 + $0xe0] sm:$0xff] %v568_v7  ;;  %837 = vmatmul.mubr.f32.gmra.mrb[56].mxu1 %v568_v7 }
 0x1e1   : > { %v526_v9 = vpop.f32.mrb[58].mxu0  ;;  %842 = vmatprep.mubr.f32.mxu1 %v1402_v30 }
 0x1e2   : > { %v569_v10 = vmax.f32 %v526_v9, 0.0  ;;  %v528_v11 = vpop.f32.mrb[59].mxu0 }
 0x1e4   : > { %601 = vst [vmem:[%s1656_s20 + $0xe8] sm:$0xff] %v569_v10  ;;  %843 = vmatmul.mubr.f32.gmra.mrb[58].mxu1 %v569_v10 }
 0x1e5   : > { %v531_v12 = vpop.f32.mrb[60].mxu0  ;;  %848 = vmatprep.mubr.f32.mxu1 %v1402_v30 }
 0x1e6   : > { %v570_v13 = vmax.f32 %v531_v12, 0.0  ;;  %v533_v14 = vpop.f32.mrb[61].mxu0 }
 0x1e8   : > { %602 = vst [vmem:[%s1656_s20 + $0xf0] sm:$0xff] %v570_v13  ;;  %849 = vmatmul.mubr.f32.gmra.mrb[60].mxu1 %v570_v13 }
 0x1e9   : > { %v536_v15 = vpop.f32.mrb[62].mxu0  ;;  %854 = vmatprep.mubr.f32.mxu1 %v1402_v30 }
 0x1ea   : > { %v571_v16 = vmax.f32 %v536_v15, 0.0  ;;  %v538_v17 = vpop.f32.mrb[63].mxu0 }
 0x1ec   : > { %603 = vst [vmem:[%s1656_s20 + $0xf8] sm:$0xff] %v571_v16  ;;  %855 = vmatmul.mubr.f32.gmra.mrb[62].mxu1 %v571_v16 }
 0x243   : > { %v670_v18 = vpop.f32.mrb[0].mxu1 }
 0x244   : > { %861 = vst [vmem:[%s1732_s11] sm:$0xff] %v670_v18  ;;  %v672_v30 = vpop.f32.mrb[1].mxu1 }
 0x245   : > { %1307 = shalt.err (!%p1304_p7)
}
 0x246   : > { %s1308_s22 = scalar_lea.hbm %s1726_s5, 4096  ;;  %s1312_s26 = scalar_lea.hbm %s1875_s2, 8192 }
 0x247   : > { %p1309_p9 = scmp.ne.s32.totalorder %s1726_s5, %s1308_s22  ;;  %p1313_p5 = scmp.lt.u32.totalorder %s1726_s5, %s1875_s2 }
 0x248   : > { %p1314_p11 = scmp.lt.u32.totalorder %s1312_s26, %s1308_s22  ;;  %p1316_p4 = scmp.lt.u32.totalorder %s1308_s22, %s1726_s5 }
 0x249   : > { %p1310_p1 = pnand %p1309_p9, %p1523_p12 }
 0x24a   : > { %p1315_p2 = por %p1314_p11, %p1313_p5 }
 0x24b   : > { %p1311_p0 = pneg %p1310_p1 }
 0x24c   : > { %p1317_p6 = por %p1316_p4, %p1315_p2 }
 0x24e   : > { %p1318_p8 = pnand %p1317_p6, %p1311_p0 }
 0x250   : > { %1321 = shalt.err (!%p1318_p8)
}
 0x251   : > { %s1404_s8 = smov 128   ;;  %s1405_s4 = smov 8   ;;  %862 = vst [vmem:[%s1732_s11 + $0x8] sm:$0xff] %v672_v30  ;;  %v676_v19 = vpop.f32.mrb[2].mxu1 }
 0x252   : > { %1173 = dma.vmem_to_hbm [thread:$0]  (%p1523_p12), %s1728_s9, 4096, %s1726_s5, %s926_s27, %s1404_s8, %s1404_s8, %s1405_s4   ;;  %v678_v20 = vpop.f32.mrb[3].mxu1 }
 0x253   : > { %863 = vst [vmem:[%s1732_s11 + $0x10] sm:$0xff] %v676_v19  ;;  %864 = vst [vmem:[%s1732_s11 + $0x18] sm:$0xff] %v678_v20  ;;  %v682_v21 = vpop.f32.mrb[4].mxu1  ;;  %s1102_s9 = sshll.u32 %s1450_s16, 13  ;;  %s961_s25 = sshll.u32 %s1732_s11, 4  ;;  %s1827_s25 = int_to_ptr.vmem [resolvable:$true] %s961_s25 }
 0x254   : > { %865 = vst [vmem:[%s1732_s11 + $0x20] sm:$0xff] %v682_v21  ;;  %v684_v22 = vpop.f32.mrb[5].mxu1  ;;  %s1825_s28 = scalar_lea.hbm %s1876_s3, %s1102_s9  ;;  %s931_s23 = scalar_lea.sflag [#allocation9], %s1574_s6 }
 0x255   : > { %866 = vst [vmem:[%s1732_s11 + $0x28] sm:$0xff] %v684_v22  ;;  %v688_v23 = vpop.f32.mrb[6].mxu1  ;;  %s1322_s16 = scalar_lea.vmem %s1827_s25, 8192  ;;  %s1406_s29 = smov [#allocation8]  }
 0x256   : > { %867 = vst [vmem:[%s1732_s11 + $0x30] sm:$0xff] %v688_v23  ;;  %v690_v24 = vpop.f32.mrb[7].mxu1  ;;  %p1323_p10 = scmp.ne.s32.totalorder %s1827_s25, %s1322_s16  ;;  %s1326_s30 = sshll.u32 %s1406_s29, 4  ;;  %s1327_s30 = int_to_ptr.vmem [resolvable:$false] %s1326_s30 }
 0x257   : > { %868 = vst [vmem:[%s1732_s11 + $0x38] sm:$0xff] %v690_v24  ;;  %v694_v25 = vpop.f32.mrb[8].mxu1  ;;  %s1328_s22 = scalar_lea.vmem %s1327_s30, 16384  ;;  %p1329_p7 = scmp.lt.s32.totalorder %s1827_s25, %s1327_s30 }
 0x258   : > { %869 = vst [vmem:[%s1732_s11 + $0x40] sm:$0xff] %v694_v25  ;;  %v696_v26 = vpop.f32.mrb[9].mxu1  ;;  %p1324_p13 = pnand %p1323_p10, %p1523_p12  ;;  %p1330_p9 = scmp.lt.s32.totalorder %s1328_s22, %s1322_s16 }
 0x259   : > { %870 = vst [vmem:[%s1732_s11 + $0x48] sm:$0xff] %v696_v26  ;;  %v700_v27 = vpop.f32.mrb[10].mxu1 }
 0x25a   : > { %871 = vst [vmem:[%s1732_s11 + $0x50] sm:$0xff] %v700_v27  ;;  %v702_v28 = vpop.f32.mrb[11].mxu1  ;;  %p1325_p3 = pneg %p1324_p13  ;;  %p1331_p1 = por %p1330_p9, %p1329_p7 }
 0x25b   : > { %872 = vst [vmem:[%s1732_s11 + $0x58] sm:$0xff] %v702_v28  ;;  %v706_v29 = vpop.f32.mrb[12].mxu1 }
 0x25c   : > { %873 = vst [vmem:[%s1732_s11 + $0x60] sm:$0xff] %v706_v29  ;;  %v708_v31 = vpop.f32.mrb[13].mxu1  ;;  %p1332_p0 = pnand %p1331_p1, %p1325_p3 }
 0x25d   : > { %874 = vst [vmem:[%s1732_s11 + $0x68] sm:$0xff] %v708_v31 }
 0x25f   : > { %v712_v32 = vpop.f32.mrb[14].mxu1 }
 0x260   : > { %875 = vst [vmem:[%s1732_s11 + $0x70] sm:$0xff] %v712_v32  ;;  %v714_v33 = vpop.f32.mrb[15].mxu1 }
 0x261   : > { %876 = vst [vmem:[%s1732_s11 + $0x78] sm:$0xff] %v714_v33 }
 0x263   : > { %v718_v34 = vpop.f32.mrb[16].mxu1 }
 0x264   : > { %877 = vst [vmem:[%s1732_s11 + $0x80] sm:$0xff] %v718_v34  ;;  %v720_v35 = vpop.f32.mrb[17].mxu1 }
 0x265   : > { %878 = vst [vmem:[%s1732_s11 + $0x88] sm:$0xff] %v720_v35 }
 0x267   : > { %v724_v36 = vpop.f32.mrb[18].mxu1 }
 0x268   : > { %879 = vst [vmem:[%s1732_s11 + $0x90] sm:$0xff] %v724_v36  ;;  %v726_v37 = vpop.f32.mrb[19].mxu1 }
 0x269   : > { %880 = vst [vmem:[%s1732_s11 + $0x98] sm:$0xff] %v726_v37 }
 0x26b   : > { %v730_v38 = vpop.f32.mrb[20].mxu1 }
 0x26c   : > { %881 = vst [vmem:[%s1732_s11 + $0xa0] sm:$0xff] %v730_v38  ;;  %v732_v39 = vpop.f32.mrb[21].mxu1 }
 0x26d   : > { %882 = vst [vmem:[%s1732_s11 + $0xa8] sm:$0xff] %v732_v39 }
 0x26f   : > { %v736_v40 = vpop.f32.mrb[22].mxu1 }
 0x270   : > { %883 = vst [vmem:[%s1732_s11 + $0xb0] sm:$0xff] %v736_v40  ;;  %v738_v41 = vpop.f32.mrb[23].mxu1 }
 0x271   : > { %884 = vst [vmem:[%s1732_s11 + $0xb8] sm:$0xff] %v738_v41 }
 0x273   : > { %v742_v42 = vpop.f32.mrb[24].mxu1 }
 0x274   : > { %885 = vst [vmem:[%s1732_s11 + $0xc0] sm:$0xff] %v742_v42  ;;  %v744_v43 = vpop.f32.mrb[25].mxu1 }
 0x275   : > { %886 = vst [vmem:[%s1732_s11 + $0xc8] sm:$0xff] %v744_v43 }
 0x277   : > { %v748_v44 = vpop.f32.mrb[26].mxu1 }
 0x278   : > { %887 = vst [vmem:[%s1732_s11 + $0xd0] sm:$0xff] %v748_v44  ;;  %v750_v45 = vpop.f32.mrb[27].mxu1 }
 0x279   : > { %888 = vst [vmem:[%s1732_s11 + $0xd8] sm:$0xff] %v750_v45 }
 0x27b   : > { %v754_v46 = vpop.f32.mrb[28].mxu1 }
 0x27c   : > { %889 = vst [vmem:[%s1732_s11 + $0xe0] sm:$0xff] %v754_v46  ;;  %v756_v47 = vpop.f32.mrb[29].mxu1 }
 0x27d   : > { %890 = vst [vmem:[%s1732_s11 + $0xe8] sm:$0xff] %v756_v47 }
 0x27f   : > { %v760_v48 = vpop.f32.mrb[30].mxu1 }
 0x280   : > { %891 = vst [vmem:[%s1732_s11 + $0xf0] sm:$0xff] %v760_v48  ;;  %v762_v49 = vpop.f32.mrb[31].mxu1 }
 0x281   : > { %892 = vst [vmem:[%s1732_s11 + $0xf8] sm:$0xff] %v762_v49 }
 0x283   : > { %v766_v50 = vpop.f32.mrb[32].mxu1 }
 0x284   : > { %893 = vst [vmem:[%s1732_s11 + $0x100] sm:$0xff] %v766_v50  ;;  %v768_v51 = vpop.f32.mrb[33].mxu1 }
 0x285   : > { %894 = vst [vmem:[%s1732_s11 + $0x108] sm:$0xff] %v768_v51 }
 0x287   : > { %v772_v52 = vpop.f32.mrb[34].mxu1 }
 0x288   : > { %895 = vst [vmem:[%s1732_s11 + $0x110] sm:$0xff] %v772_v52  ;;  %v774_v53 = vpop.f32.mrb[35].mxu1 }
 0x289   : > { %896 = vst [vmem:[%s1732_s11 + $0x118] sm:$0xff] %v774_v53 }
 0x28b   : > { %v778_v54 = vpop.f32.mrb[36].mxu1 }
 0x28c   : > { %897 = vst [vmem:[%s1732_s11 + $0x120] sm:$0xff] %v778_v54  ;;  %v780_v55 = vpop.f32.mrb[37].mxu1 }
 0x28d   : > { %898 = vst [vmem:[%s1732_s11 + $0x128] sm:$0xff] %v780_v55 }
 0x28f   : > { %v784_v56 = vpop.f32.mrb[38].mxu1 }
 0x290   : > { %899 = vst [vmem:[%s1732_s11 + $0x130] sm:$0xff] %v784_v56  ;;  %v786_v57 = vpop.f32.mrb[39].mxu1 }
 0x291   : > { %900 = vst [vmem:[%s1732_s11 + $0x138] sm:$0xff] %v786_v57 }
 0x293   : > { %v790_v58 = vpop.f32.mrb[40].mxu1 }
 0x294   : > { %901 = vst [vmem:[%s1732_s11 + $0x140] sm:$0xff] %v790_v58  ;;  %v792_v59 = vpop.f32.mrb[41].mxu1 }
 0x295   : > { %902 = vst [vmem:[%s1732_s11 + $0x148] sm:$0xff] %v792_v59 }
 0x297   : > { %v796_v60 = vpop.f32.mrb[42].mxu1 }
 0x298   : > { %903 = vst [vmem:[%s1732_s11 + $0x150] sm:$0xff] %v796_v60  ;;  %v798_v61 = vpop.f32.mrb[43].mxu1 }
 0x299   : > { %904 = vst [vmem:[%s1732_s11 + $0x158] sm:$0xff] %v798_v61 }
 0x29b   : > { %v802_v62 = vpop.f32.mrb[44].mxu1 }
 0x29c   : > { %905 = vst [vmem:[%s1732_s11 + $0x160] sm:$0xff] %v802_v62  ;;  %v804_v63 = vpop.f32.mrb[45].mxu1 }
 0x29d   : > { %906 = vst [vmem:[%s1732_s11 + $0x168] sm:$0xff] %v804_v63 }
 0x29f   : > { %v808_v0 = vpop.f32.mrb[46].mxu1 }
 0x2a0   : > { %907 = vst [vmem:[%s1732_s11 + $0x170] sm:$0xff] %v808_v0  ;;  %v810_v1 = vpop.f32.mrb[47].mxu1 }
 0x2a1   : > { %908 = vst [vmem:[%s1732_s11 + $0x178] sm:$0xff] %v810_v1 }
 0x2a3   : > { %v814_v2 = vpop.f32.mrb[48].mxu1 }
 0x2a4   : > { %909 = vst [vmem:[%s1732_s11 + $0x180] sm:$0xff] %v814_v2  ;;  %v816_v3 = vpop.f32.mrb[49].mxu1 }
 0x2a5   : > { %910 = vst [vmem:[%s1732_s11 + $0x188] sm:$0xff] %v816_v3 }
 0x2a7   : > { %v820_v4 = vpop.f32.mrb[50].mxu1 }
 0x2a8   : > { %911 = vst [vmem:[%s1732_s11 + $0x190] sm:$0xff] %v820_v4  ;;  %v822_v5 = vpop.f32.mrb[51].mxu1 }
 0x2a9   : > { %912 = vst [vmem:[%s1732_s11 + $0x198] sm:$0xff] %v822_v5 }
 0x2ab   : > { %v826_v6 = vpop.f32.mrb[52].mxu1 }
 0x2ac   : > { %913 = vst [vmem:[%s1732_s11 + $0x1a0] sm:$0xff] %v826_v6  ;;  %v828_v7 = vpop.f32.mrb[53].mxu1 }
 0x2ad   : > { %914 = vst [vmem:[%s1732_s11 + $0x1a8] sm:$0xff] %v828_v7 }
 0x2af   : > { %v832_v8 = vpop.f32.mrb[54].mxu1 }
 0x2b0   : > { %915 = vst [vmem:[%s1732_s11 + $0x1b0] sm:$0xff] %v832_v8  ;;  %v834_v9 = vpop.f32.mrb[55].mxu1 }
 0x2b1   : > { %916 = vst [vmem:[%s1732_s11 + $0x1b8] sm:$0xff] %v834_v9 }
 0x2b3   : > { %v838_v10 = vpop.f32.mrb[56].mxu1 }
 0x2b4   : > { %917 = vst [vmem:[%s1732_s11 + $0x1c0] sm:$0xff] %v838_v10  ;;  %v840_v11 = vpop.f32.mrb[57].mxu1 }
 0x2b5   : > { %918 = vst [vmem:[%s1732_s11 + $0x1c8] sm:$0xff] %v840_v11 }
 0x2b7   : > { %v844_v12 = vpop.f32.mrb[58].mxu1 }
 0x2b8   : > { %919 = vst [vmem:[%s1732_s11 + $0x1d0] sm:$0xff] %v844_v12  ;;  %v846_v13 = vpop.f32.mrb[59].mxu1 }
 0x2b9   : > { %920 = vst [vmem:[%s1732_s11 + $0x1d8] sm:$0xff] %v846_v13 }
 0x2bb   : > { %v850_v14 = vpop.f32.mrb[60].mxu1 }
 0x2bc   : > { %921 = vst [vmem:[%s1732_s11 + $0x1e0] sm:$0xff] %v850_v14  ;;  %v852_v15 = vpop.f32.mrb[61].mxu1 }
 0x2bd   : > { %922 = vst [vmem:[%s1732_s11 + $0x1e8] sm:$0xff] %v852_v15 }
 0x2bf   : > { %v856_v16 = vpop.f32.mrb[62].mxu1 }
 0x2c0   : > { %923 = vst [vmem:[%s1732_s11 + $0x1f0] sm:$0xff] %v856_v16  ;;  %v858_v17 = vpop.f32.mrb[63].mxu1 }
 0x2c1   : > { %924 = vst [vmem:[%s1732_s11 + $0x1f8] sm:$0xff] %v858_v17 }
 0x2c2   : > { %1335 = shalt.err (!%p1332_p0)
}
 0x2c3   : > { %s1336_s11 = scalar_lea.hbm %s1825_s28, 8192  ;;  %s1340_s26 = scalar_lea.hbm %s1876_s3, 16384 }
 0x2c4   : > { %p1337_p5 = scmp.ne.s32.totalorder %s1825_s28, %s1336_s11  ;;  %p1341_p4 = scmp.lt.u32.totalorder %s1825_s28, %s1876_s3 }
 0x2c5   : > { %p1342_p6 = scmp.lt.u32.totalorder %s1340_s26, %s1336_s11  ;;  %p1344_p10 = scmp.lt.u32.totalorder %s1336_s11, %s1825_s28 }
 0x2c6   : > { %p1338_p11 = pnand %p1337_p5, %p1523_p12 }
 0x2c7   : > { %p1343_p8 = por %p1342_p6, %p1341_p4 }
 0x2c8   : > { %p1339_p2 = pneg %p1338_p11 }
 0x2c9   : > { %p1345_p13 = por %p1344_p10, %p1343_p8 }
 0x2cb   : > { %p1346_p3 = pnand %p1345_p13, %p1339_p2 }
 0x2cd   : > { %1349 = shalt.err (!%p1346_p3)
}
 0x2ce   : > { %s1407_s8 = smov 256   ;;  %s1408_s4 = smov 16  }
 0x2cf   : > { %1174 = dma.vmem_to_hbm [thread:$0]  (%p1523_p12), %s1827_s25, 8192, %s1825_s28, %s931_s23, %s1407_s8, %s1407_s8, %s1408_s4  }
 0x2d0 PF: > { %s976_s9 = sand.u32 1, %s1384_s12   ;;  %p1891_p7 = scmp.ne.s32.totalorder %s1881_s19, 0 }
 0x2d1   : > { %p1892_p9 = scmp.ge.s32.totalorder %s1396_s15, 2  ;;  %s977_s5 = scalar_lea.sflag [#allocation4], %s976_s9 }
 0x2d3   : > { %p1186_p1 = pnand %p1892_p9, %p1891_p7 }
 0x2d5   : > { %1375 = dma.done.wait (!%p1186_p1), %s977_s5, 4096  }
 0x2d6   : > { %1377 = vsyncadd (!%p1186_p1), %s977_s5, 4294963200  ;;  %s986_s27 = scalar_lea.sflag [#allocation9], %s976_s9 }
 0x2d7   : > { %1379 = dma.done.wait (!%p1186_p1), %s986_s27, 8192  }
 0x2d8   : > { %1381 = vsyncadd (!%p1186_p1), %s986_s27, 4294959104  ;;  %p21_p12 = scmp.ge.s32.totalorder %s1485_s24, 4   ;;  %s1893_s12 = smov %s1388_s13 }
 0x2d9   : > { %s1894_s13 = smov %s1392_s14  ;;  %s1895_s14 = smov %s1519_s17 }
 0x2da   : > { %s1896_s15 = smov %s1485_s24  ;;  %23 = sbr.rel (!%p21_p12) target bundleno = 8 (0x8), region = 94 }
 0x2e1   :  { %991 = vsyncpa [#allocation3], 1 }
 0x2e2   :  { %993 = vsyncpa [#allocation3 + $0x1], 1 }
 0x2e3   :  { %994 = vsyncpa [#allocation6], 1 }
 0x2e4   :  { %995 = vsyncpa [#allocation4], 1 }
 0x2e5   :  { %997 = vsyncpa [#allocation4 + $0x1], 1 }
 0x2e6   :  { %998 = vsyncpa [#allocation9], 1 }
 0x2e7   :  { %1000 = vsyncpa [#allocation9 + $0x1], 1 }

</bundles_post_ra>
